<compile_context>
chip_gen: v7x
topology: tpu7x:2x2x1
jax: 0.10.0
libtpu: 0.0.40
codegen_flags: <defaults>
</compile_context>

<pallas_src>
import jax
import jax.numpy as jnp
from jax.experimental import pallas as pl
from jax.experimental.pallas import tpu as pltpu

_MAX_TB = 2048          # max batch rows per grid step (~10 MiB VMEM @ f32)
_SINGLE_STEP_MAX = 256  # batches up to this run as one grid step
_VMEM_LIMIT_BYTES = 32 * 1024 * 1024  # lift v5e's 16 MiB default; safe on all chips


def _round_up(x, m):
    return ((x + m - 1) // m) * m


def _choose_tile(b):
    """Pick the batch-tile size (static, from the traced shape).

    - tiny batches: a single grid step (per-step overhead dominates);
    - larger batches: an even number of >= 2 grid steps with tile <= _MAX_TB,
      so v7x megacore gets a balanced split and step overhead is amortized.
    Tiles are multiples of 16 (covers f32 8-sublane and bf16 16-sublane packing).
    """
    bp = _round_up(b, 16)
    if bp <= _SINGLE_STEP_MAX:
        return bp
    steps = max(pl.cdiv(bp, _MAX_TB), 2)
    steps = _round_up(steps, 2)               # even -> balanced across 2 TCs
    return _round_up(pl.cdiv(bp, steps), 16)


def _idm_kernel(s_ref, ns_ref, w1_ref, w2_ref, w3_ref, bias_ref, out_ref):
    """One batch tile: diff -> Linear+ReLU -> Linear+ReLU -> Linear."""
    cd = w1_ref.dtype                      # compute dtype fed to the MXU
    a = out_ref.shape[-1]                  # action dim

    # Biases are kept f32 and added on the f32 accumulator (VPU-friendly on
    # v5e, exact on all chips). bias_ref is the packed (3, H) buffer.
    b1 = bias_ref[0:1, :]
    b2 = bias_ref[1:2, :]
    b3 = bias_ref[2:3, 0:a]

    x = (ns_ref[...] - s_ref[...]).astype(cd)                        # (TB, F)
    h1 = jnp.dot(x, w1_ref[...], preferred_element_type=jnp.float32)
    h1 = jnp.maximum(h1 + b1, 0.0)                                   # (TB, H) f32
    h2 = jnp.dot(h1.astype(cd), w2_ref[...],
                 preferred_element_type=jnp.float32)
    h2 = jnp.maximum(h2 + b2, 0.0)                                   # (TB, H) f32
    y = jnp.dot(h2.astype(cd), w3_ref[...],
                preferred_element_type=jnp.float32)
    out_ref[...] = (y + b3).astype(out_ref.dtype)                    # (TB, A)


def pack_params(params, compute_dtype=jnp.float32):
    """Cast weights to the compute dtype and pack the 3 biases into one (3,H) f32 buffer.

    Note: weights are DMA'd once and stay VMEM-resident, so bf16 weights alone
    save almost no HBM traffic; to benefit from bf16 on v6e/v7x also pass bf16
    state/next_state (cast upstream where they are produced).
    """
    w1 = params["w1"].astype(compute_dtype)
    w2 = params["w2"].astype(compute_dtype)
    w3 = params["w3"].astype(compute_dtype)
    h = w1.shape[1]
    a = w3.shape[1]
    b3p = jnp.zeros((1, h), jnp.float32).at[:, :a].set(
        params["b3"].astype(jnp.float32))
    bias = jnp.concatenate([params["b1"].astype(jnp.float32),
                            params["b2"].astype(jnp.float32),
                            b3p], axis=0)                            # (3, H) f32
    return dict(w1=w1, w2=w2, w3=w3, bias=bias)


@jax.jit
def inverse_transition_model(state, next_state, packed):
    """Pallas forward of InverseTransitionModel.

    state, next_state: (B, F) float32 or bfloat16
    packed: output of pack_params()
    returns: (B, A) float32
    """
    B, F = state.shape
    H = packed["w1"].shape[1]
    A = packed["w3"].shape[1]

    tb = _choose_tile(B)
    grid = (pl.cdiv(B, tb),)   # partial last block handled by Pallas masking

    return pl.pallas_call(
        _idm_kernel,
        out_shape=jax.ShapeDtypeStruct((B, A), jnp.float32),
        grid=grid,
        in_specs=[
            pl.BlockSpec((tb, F), lambda i: (i, 0)),   # state tile
            pl.BlockSpec((tb, F), lambda i: (i, 0)),   # next_state tile
            pl.BlockSpec((F, H), lambda i: (0, 0)),    # w1  (VMEM-resident)
            pl.BlockSpec((H, H), lambda i: (0, 0)),    # w2  (VMEM-resident)
            pl.BlockSpec((H, A), lambda i: (0, 0)),    # w3  (VMEM-resident)
            pl.BlockSpec((3, H), lambda i: (0, 0)),    # packed biases (resident)
        ],
        out_specs=pl.BlockSpec((tb, A), lambda i: (i, 0)),
        compiler_params=pltpu.CompilerParams(
            dimension_semantics=("parallel",),
            vmem_limit_bytes=_VMEM_LIMIT_BYTES),
    )(state, next_state, packed["w1"], packed["w2"], packed["w3"],
      packed["bias"])


def init_params(key, feature_dim=50, hidden_size=128, action_dim=6):
    """Deterministic init matching nn.Linear default: U(-1/sqrt(fan_in), +)."""
    def linear(k, fan_in, fan_out):
        kw, kb = jax.random.split(k)
        bound = 1.0 / jnp.sqrt(jnp.asarray(fan_in, jnp.float32))
        w = jax.random.uniform(kw, (fan_in, fan_out), jnp.float32, -bound, bound)
        b = jax.random.uniform(kb, (1, fan_out), jnp.float32, -bound, bound)
        return w, b

    k1, k2, k3 = jax.random.split(key, 3)
    w1, b1 = linear(k1, feature_dim, hidden_size)
    w2, b2 = linear(k2, hidden_size, hidden_size)
    w3, b3 = linear(k3, hidden_size, action_dim)
    return dict(w1=w1, b1=b1, w2=w2, b2=b2, w3=w3, b3=b3)


def _reference(state, next_state, p, compute_dtype=jnp.float32):
    cd = compute_dtype
    x = (next_state - state).astype(cd)
    h1 = jnp.maximum(
        jnp.dot(x, p["w1"].astype(cd), preferred_element_type=jnp.float32)
        + p["b1"], 0.0)
    h2 = jnp.maximum(
        jnp.dot(h1.astype(cd), p["w2"].astype(cd),
                preferred_element_type=jnp.float32) + p["b2"], 0.0)
    return (jnp.dot(h2.astype(cd), p["w3"].astype(cd),
                    preferred_element_type=jnp.float32) + p["b3"])


if __name__ == "__main__":
    F_DIM, H_DIM, A_DIM = 50, 128, 6

    key = jax.random.PRNGKey(0)
    k_params, k_s, k_ns, k_s2, k_ns2 = jax.random.split(key, 5)

    params = init_params(k_params, feature_dim=F_DIM, hidden_size=H_DIM,
                         action_dim=A_DIM)
    packed_f32 = pack_params(params, jnp.float32)

    # --- small batch (single grid step), f32 ---
    B_small = 8
    s = jax.random.normal(k_s, (B_small, F_DIM), jnp.float32)
    ns = jax.random.normal(k_ns, (B_small, F_DIM), jnp.float32)
    out = jax.block_until_ready(inverse_transition_model(s, ns, packed_f32))
    ref = _reference(s, ns, params)
    assert out.shape == (B_small, A_DIM), out.shape
    assert jnp.allclose(out, ref, atol=1e-5, rtol=1e-5), (
        float(jnp.max(jnp.abs(out - ref))))

    # --- larger batch, not divisible by the tile (even grid + partial block) ---
    B_big = 1100
    s2 = jax.random.normal(k_s2, (B_big, F_DIM), jnp.float32)
    ns2 = jax.random.normal(k_ns2, (B_big, F_DIM), jnp.float32)
    out2 = jax.block_until_ready(inverse_transition_model(s2, ns2, packed_f32))
    ref2 = _reference(s2, ns2, params)
    assert out2.shape == (B_big, A_DIM), out2.shape
    assert jnp.allclose(out2, ref2, atol=1e-5, rtol=1e-5), (
        float(jnp.max(jnp.abs(out2 - ref2))))

    # --- bf16 activations + bf16 weights (halves input HBM bytes on v6e/v7x) ---
    packed_bf16 = pack_params(params, jnp.bfloat16)
    s2_bf = s2.astype(jnp.bfloat16)
    ns2_bf = ns2.astype(jnp.bfloat16)
    out3 = jax.block_until_ready(
        inverse_transition_model(s2_bf, ns2_bf, packed_bf16))
    ref3 = _reference(s2_bf, ns2_bf, params, compute_dtype=jnp.bfloat16)
    assert out3.shape == (B_big, A_DIM), out3.shape
    assert jnp.allclose(out3, ref3, atol=2e-2, rtol=2e-2), (
        float(jnp.max(jnp.abs(out3 - ref3))))

    print("KERNEL_OK")
</pallas_src>

<mosaic_0001>
module attributes {stable_mosaic.version = 11 : i64} {
  func.func @_idm_kernel(%arg0: i32, %arg1: memref<16x50xf32, #tpu.memory_space<vmem>>, %arg2: memref<16x50xf32, #tpu.memory_space<vmem>>, %arg3: memref<50x128xf32, #tpu.memory_space<vmem>>, %arg4: memref<128x128xf32, #tpu.memory_space<vmem>>, %arg5: memref<128x6xf32, #tpu.memory_space<vmem>>, %arg6: memref<3x128xf32, #tpu.memory_space<vmem>>, %arg7: memref<16x6xf32, #tpu.memory_space<vmem>>) attributes {dimension_semantics = [#tpu.dimension_semantics<parallel>], iteration_bounds = array<i64: 1>, scalar_prefetch = 0 : i64, scratch_operands = 0 : i64, tpu.core_type = #tpu.core_type<tc>, window_params = [{transform_indices = @transform_0, window_bounds = array<i64: 16, 50>}, {transform_indices = @transform_1, window_bounds = array<i64: 16, 50>}, {pipeline_mode = #tpu.pipeline_mode<synchronous>, transform_indices = @transform_2, window_bounds = array<i64: 50, 128>}, {pipeline_mode = #tpu.pipeline_mode<synchronous>, transform_indices = @transform_3, window_bounds = array<i64: 128, 128>}, {pipeline_mode = #tpu.pipeline_mode<synchronous>, transform_indices = @transform_4, window_bounds = array<i64: 128, 6>}, {pipeline_mode = #tpu.pipeline_mode<synchronous>, transform_indices = @transform_5, window_bounds = array<i64: 3, 128>}, {transform_indices = @transform_6, window_bounds = array<i64: 16, 6>}]} {
    %c0 = arith.constant 0 : index
    %c0_0 = arith.constant 0 : index
    %0 = vector.load %arg6[%c0, %c0_0] : memref<3x128xf32, #tpu.memory_space<vmem>>, vector<1x128xf32>
    %c1 = arith.constant 1 : index
    %c0_1 = arith.constant 0 : index
    %1 = vector.load %arg6[%c1, %c0_1] : memref<3x128xf32, #tpu.memory_space<vmem>>, vector<1x128xf32>
    %c2 = arith.constant 2 : index
    %c0_2 = arith.constant 0 : index
    %2 = vector.load %arg6[%c2, %c0_2] : memref<3x128xf32, #tpu.memory_space<vmem>>, vector<1x6xf32>
    %c0_3 = arith.constant 0 : index
    %c0_4 = arith.constant 0 : index
    %3 = vector.load %arg2[%c0_3, %c0_4] : memref<16x50xf32, #tpu.memory_space<vmem>>, vector<16x50xf32>
    %c0_5 = arith.constant 0 : index
    %c0_6 = arith.constant 0 : index
    %4 = vector.load %arg1[%c0_5, %c0_6] : memref<16x50xf32, #tpu.memory_space<vmem>>, vector<16x50xf32>
    %5 = arith.subf %3, %4 : vector<16x50xf32>
    %c0_7 = arith.constant 0 : index
    %c0_8 = arith.constant 0 : index
    %6 = vector.load %arg3[%c0_7, %c0_8] : memref<50x128xf32, #tpu.memory_space<vmem>>, vector<50x128xf32>
    %cst = arith.constant dense<0.000000e+00> : vector<16x128xf32>
    %7 = tpu.matmul %5, %6, %cst {dimension_numbers = #tpu.dot_dimension_numbers<[1], [0], [0], [1], [0, 0, 1, 1], [], []>} : vector<16x50xf32>, vector<50x128xf32>, vector<16x128xf32> -> vector<16x128xf32>
    %8 = vector.broadcast %0 : vector<1x128xf32> to vector<16x128xf32>
    %9 = arith.addf %7, %8 : vector<16x128xf32>
    %cst_9 = arith.constant 0.000000e+00 : f32
    %10 = vector.broadcast %cst_9 : f32 to vector<16x128xf32>
    %11 = arith.maximumf %9, %10 : vector<16x128xf32>
    %c0_10 = arith.constant 0 : index
    %c0_11 = arith.constant 0 : index
    %12 = vector.load %arg4[%c0_10, %c0_11] : memref<128x128xf32, #tpu.memory_space<vmem>>, vector<128x128xf32>
    %cst_12 = arith.constant dense<0.000000e+00> : vector<16x128xf32>
    %13 = tpu.matmul %11, %12, %cst_12 {dimension_numbers = #tpu.dot_dimension_numbers<[1], [0], [0], [1], [0, 0, 1, 1], [], []>} : vector<16x128xf32>, vector<128x128xf32>, vector<16x128xf32> -> vector<16x128xf32>
    %14 = vector.broadcast %1 : vector<1x128xf32> to vector<16x128xf32>
    %15 = arith.addf %13, %14 : vector<16x128xf32>
    %cst_13 = arith.constant 0.000000e+00 : f32
    %16 = vector.broadcast %cst_13 : f32 to vector<16x128xf32>
    %17 = arith.maximumf %15, %16 : vector<16x128xf32>
    %c0_14 = arith.constant 0 : index
    %c0_15 = arith.constant 0 : index
    %18 = vector.load %arg5[%c0_14, %c0_15] : memref<128x6xf32, #tpu.memory_space<vmem>>, vector<128x6xf32>
    %cst_16 = arith.constant dense<0.000000e+00> : vector<16x6xf32>
    %19 = tpu.matmul %17, %18, %cst_16 {dimension_numbers = #tpu.dot_dimension_numbers<[1], [0], [0], [1], [0, 0, 1, 1], [], []>} : vector<16x128xf32>, vector<128x6xf32>, vector<16x6xf32> -> vector<16x6xf32>
    %20 = vector.broadcast %2 : vector<1x6xf32> to vector<16x6xf32>
    %21 = arith.addf %19, %20 : vector<16x6xf32>
    %c0_17 = arith.constant 0 : index
    %c0_18 = arith.constant 0 : index
    %22 = vector.load %arg7[%c0_17, %c0_18] : memref<16x6xf32, #tpu.memory_space<vmem>>, vector<16x6xf32>
    tpu.vector_store %arg7[%c0_17, %c0_18], %21 {strides = array<i32>} : memref<16x6xf32, #tpu.memory_space<vmem>>, vector<16x6xf32>,
    return
  }
  func.func @transform_0(%arg0: i32) -> (i32, i32) {
    %c0_i32 = arith.constant 0 : i32
    %c0_i32_0 = arith.constant 0 : i32
    return %arg0, %c0_i32 : i32, i32
  }
  func.func @transform_1(%arg0: i32) -> (i32, i32) {
    %c0_i32 = arith.constant 0 : i32
    %c0_i32_0 = arith.constant 0 : i32
    return %arg0, %c0_i32 : i32, i32
  }
  func.func @transform_2(%arg0: i32) -> (i32, i32) {
    %c0_i32 = arith.constant 0 : i32
    %c0_i32_0 = arith.constant 0 : i32
    %c0_i32_1 = arith.constant 0 : i32
    return %c0_i32, %c0_i32_0 : i32, i32
  }
  func.func @transform_3(%arg0: i32) -> (i32, i32) {
    %c0_i32 = arith.constant 0 : i32
    %c0_i32_0 = arith.constant 0 : i32
    %c0_i32_1 = arith.constant 0 : i32
    return %c0_i32, %c0_i32_0 : i32, i32
  }
  func.func @transform_4(%arg0: i32) -> (i32, i32) {
    %c0_i32 = arith.constant 0 : i32
    %c0_i32_0 = arith.constant 0 : i32
    %c0_i32_1 = arith.constant 0 : i32
    return %c0_i32, %c0_i32_0 : i32, i32
  }
  func.func @transform_5(%arg0: i32) -> (i32, i32) {
    %c0_i32 = arith.constant 0 : i32
    %c0_i32_0 = arith.constant 0 : i32
    %c0_i32_1 = arith.constant 0 : i32
    return %c0_i32, %c0_i32_0 : i32, i32
  }
  func.func @transform_6(%arg0: i32) -> (i32, i32) {
    %c0_i32 = arith.constant 0 : i32
    %c0_i32_0 = arith.constant 0 : i32
    return %arg0, %c0_i32 : i32, i32
  }
}

</mosaic_0001>

<bundles_post_ra>
// kernel: inverse_transition_model.1
= control target key start
LH: loop header
LB: loop body
LE: loop exit
PB: predicated region body
PF: predicated region fallthrough
CT: control target
= control target key end

     0   :  { %11 = vsyncpa [#allocation3], 0  ;;  %s854_s0 = inlined_call_operand.vmem [shape: f32[8,50], index: 0, kind: input, shape index: {}]   ;;  %s855_s1 = inlined_call_operand.vmem [shape: f32[8,50], index: 1, kind: input, shape index: {}]   ;;  %s856_s2 = inlined_call_operand.hbm [shape: f32[50,128], index: 2, kind: input, shape index: {}]   ;;  %s857_s3 = inlined_call_operand.vmem [shape: f32[128,128], index: 3, kind: input, shape index: {}]   ;;  %s858_s4 = inlined_call_operand.vmem [shape: f32[128,6], index: 4, kind: input, shape index: {}]   ;;  %s859_s5 = inlined_call_operand.hbm [shape: f32[3,128], index: 5, kind: input, shape index: {}]   ;;  %s860_s6 = inlined_call_operand.hbm [shape: f32[8,6], index: 6, kind: output, shape index: {}]  }
   0x1   :  { %12 = vsyncpa [#allocation6], 0 }
   0x2   :  { %13 = vsyncpa [#allocation4], 0  ;;  %s662_s21 = smov [#allocation2]   ;;  %s590_s25 = scalar_lea.hbm %s856_s2, 896 }
   0x3   :  { %s23_s22 = sshll.u32 %s662_s21, 4  ;;  %p591_p0 = scmp.ne.s32.totalorder %s856_s2, %s590_s25  ;;  %s24_s22 = int_to_ptr.vmem [resolvable:$true] %s23_s22 }
   0x4   :  { %p594_p1 = scmp.lt.u32.totalorder %s590_s25, %s856_s2 }
   0x6   :  { %p596_p2 = pnand %p594_p1, %p591_p0 }
   0x8   :  { %599 = shalt.err (!%p596_p2)
}
   0x9   :  { %s600_s30 = scalar_lea.vmem %s24_s22, 896  ;;  %p605_p4 = scmp.lt.s32.totalorder %s24_s22, %s24_s22 }
   0xa   :  { %p601_p3 = scmp.ne.s32.totalorder %s24_s22, %s600_s30  ;;  %p606_p5 = scmp.lt.s32.totalorder %s600_s30, %s600_s30 }
   0xc   :  { %p607_p6 = por %p606_p5, %p605_p4 }
   0xe   :  { %p608_p7 = pnand %p607_p6, %p601_p3 }
  0x10   :  { %611 = shalt.err (!%p608_p7)
}
  0x11   :  { %s663_s7 = smov 128   ;;  %s664_s8 = smov 8  }
  0x12   :  { %29 = dma.hbm_to_vmem [thread:$0]  %s856_s2, 896, %s24_s22, [#allocation3], %s663_s7, %s663_s7, %s664_s8  }
  0x13   :  { %s665_s11 = smov [#allocation5]   ;;  %s612_s15 = scalar_lea.hbm %s859_s5, 64 }
  0x14   :  { %s40_s12 = sshll.u32 %s665_s11, 4  ;;  %p613_p8 = scmp.ne.s32.totalorder %s859_s5, %s612_s15  ;;  %s41_s12 = int_to_ptr.vmem [resolvable:$true] %s40_s12 }
  0x15   :  { %p616_p9 = scmp.lt.u32.totalorder %s612_s15, %s859_s5 }
  0x17   :  { %p618_p10 = pnand %p616_p9, %p613_p8 }
  0x19   :  { %621 = shalt.err (!%p618_p10)
}
  0x1a   :  { %s622_s20 = scalar_lea.vmem %s41_s12, 64  ;;  %p627_p12 = scmp.lt.s32.totalorder %s41_s12, %s41_s12 }
  0x1b   :  { %p623_p11 = scmp.ne.s32.totalorder %s41_s12, %s622_s20  ;;  %p628_p13 = scmp.lt.s32.totalorder %s622_s20, %s622_s20 }
  0x1d   :  { %p629_p0 = por %p628_p13, %p627_p12 }
  0x1f   :  { %p630_p1 = pnand %p629_p0, %p623_p11 }
  0x21   :  { %633 = shalt.err (!%p630_p1)
}
  0x22   :  { %43 = dma.hbm_to_vmem [thread:$0]  %s859_s5, 64, %s41_s12, [#allocation6]  }
  0x23   :  { %656 = dma.done.wait [#allocation3], 896  }
  0x24   :  { %657 = vsyncadd [#allocation3], 4294966400 }
  0x25   :  { %658 = dma.done.wait [#allocation6], 64  }
  0x26   :  { %659 = vsyncadd [#allocation6], 4294967232  ;;  %v59_v0 = vld [vmem:[#allocation2] sm:$0xff]  ;;  %v60_v1 = vld [vmem:[#allocation2 + $0x8] sm:$0xff]  ;;  %vm70_vm0 = vcmask 408576   ;;  %vm77_vm1 = vcmask 1041408  }
  0x27   :  { %v61_v2 = vld [vmem:[#allocation2 + $0x10] sm:$0xff]  ;;  %v509_v3 = vpack.c.bf16 %v60_v1, %v59_v0  ;;  %v62_v4 = vld [vmem:[#allocation2 + $0x18] sm:$0xff]  ;;  %v63_v5 = vld [vmem:[#allocation2 + $0x20] sm:$0xff]  ;;  %vm350_vm2 = vcmask 48128  }
  0x28   :  { %v513_v6 = vpack.c.bf16 %v62_v4, %v61_v2  ;;  %v64_v7 = vld [vmem:[#allocation2 + $0x28] sm:$0xff]  ;;  %v53_v8 = vld [vmem:[%s855_s1] sm:$0xff]  ;;  %v160_v13 = vld [vmem:[%s857_s3 + $0x10] sm:$0xff] }
  0x29   :  { %v55_v9 = vld [vmem:[%s854_s0] sm:$0xff]  ;;  %510 = vmatprep.subr.bf16.mxu0 %v509_v3  ;;  %v159_v12 = vld [vmem:[%s857_s3 + $0x8] sm:$0xff]  ;;  %v161_v14 = vld [vmem:[%s857_s3 + $0x18] sm:$0xff]  ;;  %v517_v15 = vpack.c.bf16 %v64_v7, %v63_v5 }
  0x2a   :  { %v57_v10 = vsub.f32 %v53_v8, %v55_v9  ;;  %v158_v11 = vld [vmem:[%s857_s3] sm:$0xff]  ;;  %512 = vmatpush3.bf16.msra.mxu0 %v509_v3  ;;  %v525_v17 = vpack.c.bf16 %v161_v14, %v160_v13  ;;  %v163_v19 = vld [vmem:[%s857_s3 + $0x28] sm:$0xff]  ;;  %v65_v20 = vld [vmem:[#allocation2 + $0x30] sm:$0x3] }
  0x2b   :  { %514 = vmatprep.subr.bf16.mxu0 %v513_v6  ;;  %v521_v16 = vpack.c.bf16 %v159_v12, %v158_v11  ;;  %v162_v18 = vld [vmem:[%s857_s3 + $0x20] sm:$0xff]  ;;  %v54_v21 = vld [vmem:[%s855_s1 + $0x8] sm:$0xff]  ;;  %v164_v24 = vld [vmem:[%s857_s3 + $0x30] sm:$0xff] }
  0x2c   :  { %436 = vmatprep.mubr.msk.f32.mxu0 %vm70_vm0, %v57_v10  ;;  %v529_v22 = vpack.c.bf16 %v163_v19, %v162_v18  ;;  %v56_v23 = vld [vmem:[%s854_s0 + $0x8] sm:$0xff]  ;;  %v165_v25 = vld [vmem:[%s857_s3 + $0x38] sm:$0xff]  ;;  %v166_v28 = vld [vmem:[%s857_s3 + $0x40] sm:$0xff] }
  0x2d   :  { %522 = vmatprep.subr.bf16.mxu1 %v521_v16  ;;  %v58_v26 = vsub.f32 %v54_v21, %v56_v23  ;;  %v533_v27 = vpack.c.bf16 %v165_v25, %v164_v24  ;;  %v167_v29 = vld [vmem:[%s857_s3 + $0x48] sm:$0xff]  ;;  %v168_v31 = vld [vmem:[%s857_s3 + $0x50] sm:$0xff]  ;;  %v169_v32 = vld [vmem:[%s857_s3 + $0x58] sm:$0xff] }
  0x2e   :  { %516 = vmatpush3.bf16.msra.mxu0 %v513_v6  ;;  %524 = vmatpush3.bf16.msra.mxu1 %v521_v16  ;;  %v537_v30 = vpack.c.bf16 %v167_v29, %v166_v28  ;;  %v541_v33 = vpack.c.bf16 %v169_v32, %v168_v31  ;;  %v170_v34 = vld [vmem:[%s857_s3 + $0x60] sm:$0xff]  ;;  %v171_v35 = vld [vmem:[%s857_s3 + $0x68] sm:$0xff]  ;;  %v172_v37 = vld [vmem:[%s857_s3 + $0x70] sm:$0xff] }
  0x2f   :  { %518 = vmatprep.subr.bf16.mxu0 %v517_v15  ;;  %526 = vmatprep.subr.bf16.mxu1 %v525_v17  ;;  %v545_v36 = vpack.c.bf16 %v171_v35, %v170_v34  ;;  %v173_v38 = vld [vmem:[%s857_s3 + $0x78] sm:$0xff]  ;;  %v255_v40 = vld [vmem:[%s858_s4] sm:$0xff]  ;;  %v256_v41 = vld [vmem:[%s858_s4 + $0x8] sm:$0xff] }
  0x30   :  { %v549_v39 = vpack.c.bf16 %v173_v38, %v172_v37  ;;  %v257_v42 = vld [vmem:[%s858_s4 + $0x10] sm:$0xff]  ;;  %v553_v43 = vpack.c.bf16 %v256_v41, %v255_v40  ;;  %v258_v44 = vld [vmem:[%s858_s4 + $0x18] sm:$0xff]  ;;  %v259_v46 = vld [vmem:[%s858_s4 + $0x20] sm:$0xff] }
  0x31   :  { %v557_v45 = vpack.c.bf16 %v258_v44, %v257_v42  ;;  %v260_v47 = vld [vmem:[%s858_s4 + $0x28] sm:$0xff]  ;;  %v261_v49 = vld [vmem:[%s858_s4 + $0x30] sm:$0xff]  ;;  %v262_v50 = vld [vmem:[%s858_s4 + $0x38] sm:$0xff] }
  0x32   :  { %520 = vmatpush3.bf16.msra.mxu0 %v517_v15  ;;  %528 = vmatpush3.bf16.msra.mxu1 %v525_v17  ;;  %v561_v48 = vpack.c.bf16 %v260_v47, %v259_v46  ;;  %v565_v51 = vpack.c.bf16 %v262_v50, %v261_v49  ;;  %v263_v52 = vld [vmem:[%s858_s4 + $0x40] sm:$0xff]  ;;  %v264_v53 = vld [vmem:[%s858_s4 + $0x48] sm:$0xff]  ;;  %v265_v55 = vld [vmem:[%s858_s4 + $0x50] sm:$0xff] }
  0x33   :  { %434 = vmatprep.subr.msk.mxu0 %vm77_vm1, %v65_v20  ;;  %530 = vmatprep.subr.bf16.mxu1 %v529_v22  ;;  %v569_v54 = vpack.c.bf16 %v264_v53, %v263_v52  ;;  %v266_v56 = vld [vmem:[%s858_s4 + $0x58] sm:$0xff]  ;;  %v267_v58 = vld [vmem:[%s858_s4 + $0x60] sm:$0xff]  ;;  %v268_v59 = vld [vmem:[%s858_s4 + $0x68] sm:$0xff] }
  0x34   :  { %v573_v57 = vpack.c.bf16 %v266_v56, %v265_v55  ;;  %v577_v60 = vpack.c.bf16 %v268_v59, %v267_v58  ;;  %v371_v61 = vld [vmem:[#allocation5] ss:$0 sm:$0xff]  ;;  %v269_v4 = vld [vmem:[%s858_s4 + $0x70] sm:$0xff]  ;;  %v375_v7 = vld [vmem:[#allocation5 + $0x1] ss:$0 sm:$0xff] }
  0x35   :  { %v270_v5 = vld [vmem:[%s858_s4 + $0x78] sm:$0xff] }
  0x36   :  { %435 = vmatpush3.msk.msra.mxu0 %vm77_vm1, %v65_v20  ;;  %532 = vmatpush3.bf16.msra.mxu1 %v529_v22  ;;  %v581_v6 = vpack.c.bf16 %v270_v5, %v269_v4  ;;  %v376_v14 = vld [vmem:[#allocation5 + $0x2] ss:$0 sm:$0xff] }
  0x37   :  { %437 = vmatmul.mubr.msk.f32.vlgmr.msra.gmra.mrb[0].mxu0 %vm70_vm0, %v58_v26  ;;  %534 = vmatprep.subr.bf16.mxu1 %v533_v27 }
  0x38   :  { %554 = vmatprep.subr.bf16.mxu0 %v553_v43 }
  0x39   :  { %556 = vmatpush3.bf16.msra.mxu0 %v553_v43 }
  0x3a   :  { %536 = vmatpush3.bf16.msra.mxu1 %v533_v27  ;;  %558 = vmatprep.subr.bf16.mxu0 %v557_v45 }
  0x3b   :  { %538 = vmatprep.subr.bf16.mxu1 %v537_v30 }
  0x3d   :  { %560 = vmatpush3.bf16.msra.mxu0 %v557_v45 }
  0x3e   :  { %540 = vmatpush3.bf16.msra.mxu1 %v537_v30  ;;  %562 = vmatprep.subr.bf16.mxu0 %v561_v48 }
  0x3f   :  { %542 = vmatprep.subr.bf16.mxu1 %v541_v33 }
  0x41   :  { %564 = vmatpush3.bf16.msra.mxu0 %v561_v48 }
  0x42   :  { %544 = vmatpush3.bf16.msra.mxu1 %v541_v33  ;;  %566 = vmatprep.subr.bf16.mxu0 %v565_v51 }
  0x43   :  { %546 = vmatprep.subr.bf16.mxu1 %v545_v36 }
  0x45   :  { %568 = vmatpush3.bf16.msra.mxu0 %v565_v51 }
  0x46   :  { %548 = vmatpush3.bf16.msra.mxu1 %v545_v36  ;;  %570 = vmatprep.subr.bf16.mxu0 %v569_v54 }
  0x47   :  { %550 = vmatprep.subr.bf16.mxu1 %v549_v39 }
  0x49   :  { %572 = vmatpush3.bf16.msra.mxu0 %v569_v54 }
  0x4a   :  { %552 = vmatpush3.bf16.msra.mxu1 %v549_v39  ;;  %574 = vmatprep.subr.bf16.mxu0 %v573_v57 }
  0x4d   :  { %576 = vmatpush3.bf16.msra.mxu0 %v573_v57 }
  0x4e   :  { %578 = vmatprep.subr.bf16.mxu0 %v577_v60 }
  0x51   :  { %580 = vmatpush3.bf16.msra.mxu0 %v577_v60 }
  0x52   :  { %582 = vmatprep.subr.bf16.mxu0 %v581_v6 }
  0x55   :  { %584 = vmatpush3.bf16.msra.mxu0 %v581_v6 }
 0x10a   :  { %v438_v62 = vpop.f32.mrb[0].mxu0 }
 0x10b   :  { %v153_v63 = vadd.f32 %v438_v62, %v371_v61  ;;  %v147_v0 = vpop.f32.mrb[1].mxu0 }
 0x10c   :  { %v148_v1 = vadd.f32 %v371_v61, %v147_v0 }
 0x10d   :  { %v157_v3 = vmax.f32 %v153_v63, 0.0 }
 0x10e   :  { %v156_v2 = vmax.f32 %v148_v1, 0.0 }
 0x110   :  { %471 = vmatprep.mubr.f32.mxu1 %v156_v2 }
 0x111   :  { %472 = vmatmul.mubr.f32.vlgmr.msra.gmra.mrb[0].mxu1 %v157_v3 }
 0x1e4   :  { %v473_v8 = vpop.f32.mrb[0].mxu1 }
 0x1e5   :  { %v250_v9 = vadd.f32 %v473_v8, %v375_v7  ;;  %v244_v10 = vpop.f32.mrb[1].mxu1 }
 0x1e6   :  { %v245_v11 = vadd.f32 %v375_v7, %v244_v10 }
 0x1e7   :  { %v254_v13 = vmax.f32 %v250_v9, 0.0 }
 0x1e8   :  { %v253_v12 = vmax.f32 %v245_v11, 0.0 }
 0x1ea   :  { %506 = vmatprep.mubr.f32.mxu0 %v253_v12 }
 0x1eb   :  { %507 = vmatmul.mubr.f32.vlgmr.msra.gmra.mrb[2].mxu0 %v254_v13 }
 0x2be   :  { %v508_v15 = vpop.f32.mrb[2].mxu0 }
 0x2bf   :  { %v347_v16 = vadd.f32 %v508_v15, %v376_v14  ;;  %v341_v17 = vpop.f32.mrb[3].mxu0 }
 0x2c0   :  { %v342_v18 = vadd.f32 %v376_v14, %v341_v17 }
 0x2c1   :  { %352 = vst.msk [vmem:[#allocation7 + $0x8] sm:$0xff] %vm350_vm2, %v347_v16 }
 0x2c2   :  { %351 = vst.msk [vmem:[#allocation7] sm:$0xff] %vm350_vm2, %v342_v18 }
 0x2c3   :  { %357 = vsyncadd [#allocation4], 128  ;;  %s666_s4 = smov [#allocation7]  }
 0x2c4   :  { %s358_s18 = sshll.u32 %s666_s4, 4  ;;  %s359_s18 = int_to_ptr.vmem [resolvable:$true] %s358_s18 }
 0x2c5   :  { %s634_s19 = scalar_lea.vmem %s359_s18, 128  ;;  %s638_s20 = scalar_lea.vmem %s359_s18, 256 }
 0x2c6   :  { %p635_p2 = scmp.ne.s32.totalorder %s359_s18, %s634_s19  ;;  %p639_p3 = scmp.lt.s32.totalorder %s359_s18, %s359_s18 }
 0x2c7   :  { %p640_p4 = scmp.lt.s32.totalorder %s638_s20, %s634_s19 }
 0x2c9   :  { %p641_p5 = por %p640_p4, %p639_p3 }
 0x2cb   :  { %p642_p6 = pnand %p641_p5, %p635_p2 }
 0x2cd   :  { %645 = shalt.err (!%p642_p6)
}
 0x2ce   :  { %s646_s21 = scalar_lea.hbm %s860_s6, 128 }
 0x2cf   :  { %p647_p7 = scmp.ne.s32.totalorder %s860_s6, %s646_s21  ;;  %p650_p8 = scmp.lt.u32.totalorder %s646_s21, %s860_s6 }
 0x2d1   :  { %p652_p9 = pnand %p650_p8, %p647_p7 }
 0x2d3   :  { %655 = shalt.err (!%p652_p9)
}
 0x2d4   :  { %364 = dma.vmem_to_hbm [thread:$0]  %s359_s18, 128, %s860_s6, [#allocation4], %s663_s7, %s663_s7, %s664_s8  }
 0x2d5   :  { %660 = dma.done.wait [#allocation4], 256  }
 0x2d6   :  { %661 = vsyncadd [#allocation4], 4294967040 }
 0x2d7   :  { %368 = vsyncpa [#allocation3], 1 }
 0x2d8   :  { %369 = vsyncpa [#allocation6], 1 }
 0x2d9   :  { %370 = vsyncpa [#allocation4], 1 }

</bundles_post_ra>
